<compile_context>
chip_gen: v6e
topology: v6e:2x2x1
jax: 0.10.0
libtpu: 0.0.40
codegen_flags: <defaults>
</compile_context>

<pallas_src>
import math
import functools

import jax
import jax.numpy as jnp
from jax.experimental import pallas as pl
from jax.experimental.pallas import tpu as pltpu


# ----------------------------------------------------------------------------
# Pallas kernels
# ----------------------------------------------------------------------------

def _edge_emb_eval_kernel(x_ref, w_ref, b_ref, o_ref):
    # x_ref: (TR, d_edge), w_ref: (d_edge, d_emb), b_ref: (1, d_emb).
    # sqrt(d_emb) is already folded into w/b, so this is a pure matmul+bias.
    y = jnp.dot(x_ref[...], w_ref[...], preferred_element_type=jnp.float32)
    y = y + b_ref[...].astype(jnp.float32)
    o_ref[...] = y.astype(o_ref.dtype)


def _edge_emb_train_kernel(seed_ref, x_ref, w_ref, b_ref, o_ref, *,
                           keep_scale, drop_threshold):
    y = jnp.dot(x_ref[...], w_ref[...], preferred_element_type=jnp.float32)
    y = y + b_ref[...].astype(jnp.float32)

    # Hardware PRNG: independent stream per (seed, grid step) — no collisions
    # between tile i of seed s and tile i-1 of seed s+1.
    pltpu.prng_seed(seed_ref[0], pl.program_id(0))
    bits = pltpu.prng_random_bits(y.shape)
    # Integer-domain keep test on the low 24 bits (sign-safe for int32/uint32,
    # no u32->f32 convert, no 2^-24 multiply).
    low24 = bits & jnp.asarray(0xFFFFFF, dtype=bits.dtype)
    keep = low24 >= jnp.asarray(drop_threshold, dtype=bits.dtype)
    # Single fused 1/(1-p) rescale inside the select.
    o_ref[...] = jnp.where(keep, y * keep_scale, 0.0).astype(o_ref.dtype)


# ----------------------------------------------------------------------------
# Tiling helper
# ----------------------------------------------------------------------------

def _choose_row_tile(rows, d_in, d_out, itemsize=4, *,
                     max_rows=1024, vmem_budget=2 * 1024 * 1024, min_grid=2):
    """Row tile: budget = double-buffered in/out blocks + f32 matmul result +
    PRNG bits + keep mask.  Capped at 1024 rows (bandwidth already saturates
    near 512) and shrunk so the grid has >= min_grid steps (megacore)."""
    per_row = 2 * (d_in + d_out) * itemsize + 3 * d_out * 4
    tr = max(8, vmem_budget // per_row)
    tr = min(tr, max_rows, rows)
    if rows >= 2 * 8:
        tr = min(tr, -(-rows // min_grid))     # aim for at least min_grid steps
    tr = max(8, (tr // 8) * 8)                 # multiple of 8 sublanes
    return int(tr)


# ----------------------------------------------------------------------------
# Wrapper
# ----------------------------------------------------------------------------

def edge_embeddings_pallas(x, weight, bias, *, dropout_rate=0.0, seed=0,
                           training=False):
    """dropout(x @ weight + bias) over the last dim of x.

    `weight` / `bias` are expected to already include the sqrt(d_emb) output
    scale (see EdgeEmbeddingsPallas), so no per-element scale runs in-kernel.
    """
    d_edge = x.shape[-1]
    d_emb = weight.shape[1]
    lead_shape = x.shape[:-1]

    rows = 1
    for s in lead_shape:
        rows *= int(s)

    x2 = x.reshape(rows, d_edge)
    bias2 = bias.reshape(1, d_emb)

    itemsize = jnp.dtype(x.dtype).itemsize
    tr = _choose_row_tile(rows, d_edge, d_emb, itemsize)
    grid = (pl.cdiv(rows, tr),)                # ragged tail masked by Pallas

    rate = float(dropout_rate) if training else 0.0
    out_shape = jax.ShapeDtypeStruct((rows, d_emb), x.dtype)
    compiler_params = pltpu.CompilerParams(dimension_semantics=("parallel",))

    if rate > 0.0:
        keep_scale = 1.0 / (1.0 - rate)
        drop_threshold = int(round(rate * (1 << 24)))
        kernel = functools.partial(_edge_emb_train_kernel,
                                   keep_scale=keep_scale,
                                   drop_threshold=drop_threshold)
        seed_arr = jnp.asarray([seed], dtype=jnp.int32)
        out = pl.pallas_call(
            kernel,
            out_shape=out_shape,
            grid_spec=pltpu.PrefetchScalarGridSpec(
                num_scalar_prefetch=1,          # seed -> SMEM
                grid=grid,
                in_specs=[
                    pl.BlockSpec((tr, d_edge), lambda i, s: (i, 0)),
                    pl.BlockSpec((d_edge, d_emb), lambda i, s: (0, 0)),
                    pl.BlockSpec((1, d_emb), lambda i, s: (0, 0)),
                ],
                out_specs=pl.BlockSpec((tr, d_emb), lambda i, s: (i, 0)),
            ),
            compiler_params=compiler_params,
        )(seed_arr, x2, weight, bias2)
    else:
        # Inference path: no seed prefetch, no dead kernel argument.
        out = pl.pallas_call(
            _edge_emb_eval_kernel,
            out_shape=out_shape,
            grid_spec=pltpu.PrefetchScalarGridSpec(
                num_scalar_prefetch=0,
                grid=grid,
                in_specs=[
                    pl.BlockSpec((tr, d_edge), lambda i: (i, 0)),
                    pl.BlockSpec((d_edge, d_emb), lambda i: (0, 0)),
                    pl.BlockSpec((1, d_emb), lambda i: (0, 0)),
                ],
                out_specs=pl.BlockSpec((tr, d_emb), lambda i: (i, 0)),
            ),
            compiler_params=compiler_params,
        )(x2, weight, bias2)

    return out.reshape(*lead_shape, d_emb)


class EdgeEmbeddingsPallas:
    """JAX/Pallas mirror of CoMPT's Edge_Embeddings module."""

    def __init__(self, d_edge, d_emb, dropout, key):
        self.d_emb = d_emb
        self.dropout = float(dropout)
        kw, kb = jax.random.split(key)
        bound = 1.0 / math.sqrt(d_edge)          # nn.Linear default init range
        w = jax.random.uniform(kw, (d_edge, d_emb), jnp.float32, -bound, bound)
        b = jax.random.uniform(kb, (d_emb,), jnp.float32, -bound, bound)
        # Stored as (d_edge, d_emb) == torch lut.weight.T, with sqrt(d_emb)
        # baked in once so the kernel never does a per-element output scale.
        scale = math.sqrt(d_emb)
        self.weight = w * scale
        self.bias = b * scale
        self._raw_weight = w                      # unscaled, for reference check
        self._raw_bias = b

    def __call__(self, x, *, training=False, seed=0):
        return edge_embeddings_pallas(x, self.weight, self.bias,
                                      dropout_rate=self.dropout,
                                      seed=seed, training=training)


# ----------------------------------------------------------------------------
# Plain-JAX reference (eval mode: dropout = identity), torch formula verbatim
# ----------------------------------------------------------------------------

def _edge_embeddings_ref(x, weight, bias, d_emb):
    y = x.astype(jnp.float32) @ weight.astype(jnp.float32) + bias
    return y * math.sqrt(d_emb)


# ----------------------------------------------------------------------------
# Main
# ----------------------------------------------------------------------------

if __name__ == "__main__":
    key = jax.random.PRNGKey(0)
    B, N_NODES, D_EDGE, D_EMB = 2, 8, 16, 128   # edge tensor [B, N, N, d_edge]
    DROPOUT = 0.25

    kx, kx2, kmod = jax.random.split(key, 3)
    x = jax.random.normal(kx, (B, N_NODES, N_NODES, D_EDGE), dtype=jnp.float32)

    mod = EdgeEmbeddingsPallas(D_EDGE, D_EMB, DROPOUT, kmod)

    # Eval path (dropout identity) — exact check against plain-JAX reference.
    out = jax.block_until_ready(mod(x, training=False))
    ref = _edge_embeddings_ref(x, mod._raw_weight, mod._raw_bias, D_EMB)
    assert out.shape == (B, N_NODES, N_NODES, D_EMB)
    assert jnp.allclose(out, ref, atol=1e-4, rtol=1e-4), \
        float(jnp.max(jnp.abs(out - ref)))

    # Ragged row count (rows not a multiple of the row tile): the kernel's
    # grid uses pl.cdiv and Pallas masks the tail block — no pad/slice ops.
    xr = jax.random.normal(kx2, (2, 9, 9, D_EDGE), dtype=jnp.float32)
    out_r = jax.block_until_ready(mod(xr, training=False))
    ref_r = _edge_embeddings_ref(xr, mod._raw_weight, mod._raw_bias, D_EMB)
    assert out_r.shape == (2, 9, 9, D_EMB)
    assert jnp.allclose(out_r, ref_r, atol=1e-4, rtol=1e-4), \
        float(jnp.max(jnp.abs(out_r - ref_r)))

    # Training path uses the TPU hardware PRNG (pltpu.prng_*), which has no
    # CPU/interpret lowering — only exercise it on a real TPU backend.
    if jax.default_backend() == "tpu":
        out_tr = jax.block_until_ready(mod(x, training=True, seed=123))
        keep = out_tr != 0.0
        drop_frac = 1.0 - float(jnp.mean(keep.astype(jnp.float32)))
        assert 0.10 < drop_frac < 0.40, drop_frac
        # Kept elements equal the eval output scaled by 1/(1-p).
        rescaled = jnp.where(keep, out_tr * (1.0 - DROPOUT), ref)
        assert jnp.allclose(rescaled, ref, atol=1e-3, rtol=1e-3)

    print("KERNEL_OK")
</pallas_src>

<mosaic_0001>
module attributes {stable_mosaic.version = 11 : i64} {
  func.func @_edge_emb_eval_kernel(%arg0: i32, %arg1: memref<64x16xf32, #tpu.memory_space<vmem>>, %arg2: memref<16x128xf32, #tpu.memory_space<vmem>>, %arg3: memref<1x128xf32, #tpu.memory_space<vmem>>, %arg4: memref<64x128xf32, #tpu.memory_space<vmem>>) attributes {dimension_semantics = [#tpu.dimension_semantics<parallel>], iteration_bounds = array<i64: 2>, scalar_prefetch = 0 : i64, scratch_operands = 0 : i64, tpu.core_type = #tpu.core_type<tc>, window_params = [{transform_indices = @transform_0, window_bounds = array<i64: 64, 16>}, {pipeline_mode = #tpu.pipeline_mode<synchronous>, transform_indices = @transform_1, window_bounds = array<i64: 16, 128>}, {pipeline_mode = #tpu.pipeline_mode<synchronous>, transform_indices = @transform_2, window_bounds = array<i64: 1, 128>}, {transform_indices = @transform_3, window_bounds = array<i64: 64, 128>}]} {
    %c0 = arith.constant 0 : index
    %c0_0 = arith.constant 0 : index
    %0 = vector.load %arg1[%c0, %c0_0] : memref<64x16xf32, #tpu.memory_space<vmem>>, vector<64x16xf32>
    %c0_1 = arith.constant 0 : index
    %c0_2 = arith.constant 0 : index
    %1 = vector.load %arg2[%c0_1, %c0_2] : memref<16x128xf32, #tpu.memory_space<vmem>>, vector<16x128xf32>
    %cst = arith.constant dense<0.000000e+00> : vector<64x128xf32>
    %2 = tpu.matmul %0, %1, %cst {dimension_numbers = #tpu.dot_dimension_numbers<[1], [0], [0], [1], [0, 0, 1, 1], [], []>} : vector<64x16xf32>, vector<16x128xf32>, vector<64x128xf32> -> vector<64x128xf32>
    %c0_3 = arith.constant 0 : index
    %c0_4 = arith.constant 0 : index
    %3 = vector.load %arg3[%c0_3, %c0_4] : memref<1x128xf32, #tpu.memory_space<vmem>>, vector<1x128xf32>
    %4 = vector.broadcast %3 : vector<1x128xf32> to vector<64x128xf32>
    %5 = arith.addf %2, %4 : vector<64x128xf32>
    %c0_5 = arith.constant 0 : index
    %c0_6 = arith.constant 0 : index
    %6 = vector.load %arg4[%c0_5, %c0_6] : memref<64x128xf32, #tpu.memory_space<vmem>>, vector<64x128xf32>
    tpu.vector_store %arg4[%c0_5, %c0_6], %5 {strides = array<i32>} : memref<64x128xf32, #tpu.memory_space<vmem>>, vector<64x128xf32>,
    return
  }
  func.func @transform_0(%arg0: i32) -> (i32, i32) {
    %c0_i32 = arith.constant 0 : i32
    %c0_i32_0 = arith.constant 0 : i32
    return %arg0, %c0_i32 : i32, i32
  }
  func.func @transform_1(%arg0: i32) -> (i32, i32) {
    %c0_i32 = arith.constant 0 : i32
    %c0_i32_0 = arith.constant 0 : i32
    %c0_i32_1 = arith.constant 0 : i32
    return %c0_i32, %c0_i32_0 : i32, i32
  }
  func.func @transform_2(%arg0: i32) -> (i32, i32) {
    %c0_i32 = arith.constant 0 : i32
    %c0_i32_0 = arith.constant 0 : i32
    %c0_i32_1 = arith.constant 0 : i32
    return %c0_i32, %c0_i32_0 : i32, i32
  }
  func.func @transform_3(%arg0: i32) -> (i32, i32) {
    %c0_i32 = arith.constant 0 : i32
    %c0_i32_0 = arith.constant 0 : i32
    return %arg0, %c0_i32 : i32, i32
  }
}

</mosaic_0001>

<bundles_post_ra>
// kernel: tpu_custom_call.1
= control target key start
LH: loop header
LB: loop body
LE: loop exit
PB: predicated region body
PF: predicated region fallthrough
CT: control target
= control target key end

     0   :  { %8 = vsyncpa [#allocation3], 0  ;;  %s703_s0 = inlined_call_operand.vmem [shape: f32[128,16], index: 0, kind: input, shape index: {}]   ;;  %s704_s1 = inlined_call_operand.vmem [shape: f32[16,128], index: 1, kind: input, shape index: {}]   ;;  %s705_s2 = inlined_call_operand.vmem [shape: f32[1,128], index: 2, kind: input, shape index: {}]   ;;  %s706_s3 = inlined_call_operand.hbm [shape: f32[128,128], index: 3, kind: output, shape index: {}]  }
   0x1   :  { %10 = vsyncpa [#allocation3 + $0x1], 0  ;;  %s581_s12 = smov 0   ;;  %s583_s13 = smov 0  }
   0x2   :  { %s585_s14 = smov 0   ;;  %s587_s15 = smov 0  }
   0x3 LB: > { %s602_s16 = sadd.s32 4294967295, %s556_s15   ;;  %s403_s17 = sadd.s32 4294967294, %s556_s15   ;;  %s556_s15 = sphi %s587_s15, %s712_s15   ;;  %s552_s14 = sphi %s585_s14, %s711_s14   ;;  %s548_s13 = sphi %s583_s13, %s710_s13   ;;  %s544_s12 = sphi %s581_s12, %s709_s12  }
   0x4   : > { %s606_s18 = sadd.s32 1, %s556_s15   ;;  %s91_s19 = sadd.s32 1, %s552_s14 }
   0x5   : > { %s88_s20 = ssub.s32 %s556_s15, %s606_s18  ;;  %p101_p0 = scmp.ne.s32.totalorder %s552_s14, %s548_s13 }
   0x6   : > { %p89_p1 = scmp.eq.s32.totalorder %s88_s20, 0  ;;  %p102_p2 = scmp.eq.s32.totalorder %s602_s16, 1 }
   0x7   : > { %p107_p3 = scmp.ne.s32.totalorder %s548_s13, %s544_s12  ;;  %p108_p4 = scmp.eq.s32.totalorder %s403_s17, 1 }
   0x8   : > { %s617_s21 = scalar_select %p89_p1, %s552_s14, %s91_s19  }
   0x9   : > { %p619_p5 = por %p102_p2, %p101_p0  ;;  %p623_p6 = por %p108_p4, %p107_p3 }
   0xa   : > { %p406_p7 = scmp.ge.s32.totalorder %s556_s15, 1  ;;  %p141_p8 = scmp.lt.s32.totalorder %s556_s15, 3 }
   0xc   : > { %p142_p9 = pnand %p406_p7, %p141_p8 }
   0xd   : > { %s408_s28 = sshll.u32 (!%p142_p9), %s602_s16, 3  ;;  %s162_s6 = sand.u32 (!%p142_p9), 1, %s548_s13  }
   0xe   : > { %145 = sbr.rel (%p142_p9) target bundleno = 240 (0xf0), region = 32  ;;  %p166_p10 = scmp.lt.s32.totalorder (!%p142_p9), %s408_s28, 15 }
   0xf   : > { %s407_s7 = sshll.u32 (!%p142_p9), %s162_s6, 6  ;;  %s424_s11 = sshll.u32 (!%p142_p9), %s602_s16, 10 }
  0x10   : > { %s164_s10 = scalar_lea.vmem (!%p142_p9), [#allocation2], %s407_s7  ;;  %s657_s24 = scalar_lea.hbm (!%p142_p9), %s706_s3, %s424_s11 }
  0x11   : > { %s341_s17 = sshll.u32 (!%p142_p9), %s164_s10, 4  ;;  %s663_s16 = scalar_lea.sflag (!%p142_p9), [#allocation3], %s162_s6  ;;  %s659_s17 = int_to_ptr.vmem [resolvable:$true] %s341_s17 }
  0x12   : > { %s496_s25 = scalar_lea.vmem (!%p142_p9), %s659_s17, 1024  ;;  %s558_s26 = smov (!%p142_p9), [#allocation2]  }
  0x13   : > { %v181_v0 = vld [vmem:[%s704_s1 + $0x8] sm:$0xff]  ;;  %v180_v1 = vld [vmem:[%s704_s1] sm:$0xff]  ;;  %s714_s28 = smov (!%p166_p10, %s408_s28), 15  ;;  %vm189_vm0 = vcmask 130048   ;;  %p497_p11 = scmp.ne.s32.totalorder %s659_s17, %s496_s25 }
  0x14   : > { %435 = vmatprep.subr.mxu0 %v181_v0  ;;  %451 = vmatprep.subr.mxu1 %v181_v0  ;;  %s409_s29 = sshll.u32 %s714_s28, 3  ;;  %v410_v10 = vld [vmem:[%s705_s2] ss:$0 sm:$0xff]  ;;  %s500_s27 = sshll.u32 %s558_s26, 4  ;;  %s501_s27 = int_to_ptr.vmem [resolvable:$false] %s500_s27 }
  0x15   : > { %436 = vmatpush3.msra.mxu0 %v181_v0  ;;  %453 = vmatpush3.msra.mxu1 %v181_v0  ;;  %s169_s5 = scalar_lea.vmem %s703_s0, %s409_s29  ;;  %p498_p12 = pnand %p497_p11, %p619_p5 }
  0x16   : > { %437 = vmatprep.subr.mxu0 %v180_v1  ;;  %452 = vmatprep.subr.mxu1 %v180_v1  ;;  %v172_v2 = vld [vmem:[%s169_s5] sm:$0xff]  ;;  %v173_v4 = vld [vmem:[%s169_s5 + $0x8] sm:$0xff]  ;;  %v174_v6 = vld [vmem:[%s169_s5 + $0x10] sm:$0xff]  ;;  %s502_s28 = scalar_lea.vmem %s501_s27, 2048  ;;  %p503_p0 = scmp.lt.s32.totalorder %s659_s17, %s501_s27 }
  0x17   : > { %438 = vmatpush3.msra.mxu0 %v180_v1  ;;  %454 = vmatpush3.msra.mxu1 %v180_v1  ;;  %v176_v3 = vld [vmem:[%s169_s5 + $0x20] sm:$0xff]  ;;  %v177_v5 = vld [vmem:[%s169_s5 + $0x28] sm:$0xff]  ;;  %v178_v7 = vld [vmem:[%s169_s5 + $0x30] sm:$0xff]  ;;  %p499_p13 = pneg %p498_p12  ;;  %p504_p1 = scmp.lt.s32.totalorder %s502_s28, %s496_s25 }
  0x18   : > { %439 = vmatprep.mubr.msk.f32.mxu0 %vm189_vm0, %v172_v2  ;;  %445 = vmatprep.mubr.msk.f32.mxu1 %vm189_vm0, %v176_v3  ;;  %v175_v8 = vld [vmem:[%s169_s5 + $0x18] sm:$0xff] }
  0x19   : > { %440 = vmatmul.mubr.msk.f32.vlgmr.msra.gmra.mxu0 %vm189_vm0, %v173_v4  ;;  %446 = vmatmul.mubr.msk.f32.vlgmr.msra.gmra.mxu1 %vm189_vm0, %v177_v5  ;;  %v179_v9 = vld [vmem:[%s169_s5 + $0x38] sm:$0xff]  ;;  %p505_p2 = por %p504_p1, %p503_p0 }
  0x1a   : > { %442 = vmatprep.mubr.msk.f32.mxu0 %vm189_vm0, %v174_v6  ;;  %448 = vmatprep.mubr.msk.f32.mxu1 %vm189_vm0, %v178_v7 }
  0x1b   : > { %p506_p3 = pnand %p505_p2, %p499_p13 }
  0x1d   : > { %443 = vmatmul.mubr.msk.f32.gmra.mxu0 %vm189_vm0, %v175_v8  ;;  %449 = vmatmul.mubr.msk.f32.gmra.mxu1 %vm189_vm0, %v179_v9 }
  0xd9   : > { %v441_v11 = vpop.f32.mrf.mxu0  ;;  %v447_v12 = vpop.f32.mrf.mxu1 }
  0xda   : > { %v286_v13 = vadd.f32 %v441_v11, %v410_v10  ;;  %v306_v14 = vadd.f32 %v447_v12, %v410_v10 }
  0xdb   : > { %v280_v15 = vpop.f32.mrf.mxu0  ;;  %v300_v16 = vpop.f32.mrf.mxu1 }
  0xdc   : > { %320 = vst [vmem:[%s164_s10 + $0x8] sm:$0xff] %v286_v13  ;;  %324 = vst [vmem:[%s164_s10 + $0x28] sm:$0xff] %v306_v14  ;;  %v281_v17 = vadd.f32 %v410_v10, %v280_v15  ;;  %v301_v18 = vadd.f32 %v410_v10, %v300_v16 }
  0xdd   : > { %v444_v19 = vpop.f32.mrf.mxu0  ;;  %v450_v20 = vpop.f32.mrf.mxu1 }
  0xde   : > { %319 = vst [vmem:[%s164_s10] sm:$0xff] %v281_v17  ;;  %323 = vst [vmem:[%s164_s10 + $0x20] sm:$0xff] %v301_v18  ;;  %v296_v21 = vadd.f32 %v444_v19, %v410_v10  ;;  %v316_v22 = vadd.f32 %v450_v20, %v410_v10 }
  0xdf   : > { %v290_v23 = vpop.f32.mrf.mxu0  ;;  %v310_v24 = vpop.f32.mrf.mxu1 }
  0xe0   : > { %322 = vst [vmem:[%s164_s10 + $0x18] sm:$0xff] %v296_v21  ;;  %326 = vst [vmem:[%s164_s10 + $0x38] sm:$0xff] %v316_v22  ;;  %v291_v25 = vadd.f32 %v410_v10, %v290_v23  ;;  %v311_v26 = vadd.f32 %v410_v10, %v310_v24 }
  0xe2   : > { %321 = vst [vmem:[%s164_s10 + $0x10] sm:$0xff] %v291_v25  ;;  %325 = vst [vmem:[%s164_s10 + $0x30] sm:$0xff] %v311_v26 }
  0xe3   : > { %509 = shalt.err (!%p506_p3)
}
  0xe4   : > { %s510_s29 = scalar_lea.hbm %s657_s24, 1024  ;;  %s514_s5 = scalar_lea.hbm %s706_s3, 2048 }
  0xe5   : > { %p511_p4 = scmp.ne.s32.totalorder %s657_s24, %s510_s29  ;;  %p515_p9 = scmp.lt.s32.totalorder %s657_s24, %s706_s3 }
  0xe6   : > { %p516_p10 = scmp.lt.s32.totalorder %s514_s5, %s510_s29 }
  0xe7   : > { %p512_p7 = pnand %p511_p4, %p619_p5 }
  0xe8   : > { %p517_p11 = por %p516_p10, %p515_p9 }
  0xe9   : > { %p513_p8 = pneg %p512_p7 }
  0xeb   : > { %p518_p12 = pnand %p517_p11, %p513_p8 }
  0xed   : > { %521 = shalt.err (!%p518_p12)
}
  0xee   : > { %s559_s8 = smov 128   ;;  %s560_s9 = smov 8  }
  0xef   : > { %455 = dma.vmem_to_hbm [thread:$0]  (%p619_p5), %s659_s17, 1024, %s657_s24, %s663_s16, %s559_s8, %s559_s8, %s560_s9  }
  0xf0 PF: > { %p461_p13 = scmp.ge.s32.totalorder %s556_s15, 2  ;;  %s356_s10 = sand.u32 1, %s544_s12  }
  0xf1   : > { %s357_s11 = scalar_lea.sflag [#allocation3], %s356_s10 }
  0xf2   : > { %p458_p0 = pnand %p461_p13, %p623_p6 }
  0xf4   : > { %p459_p1 = pneg %p458_p0 }
  0xf6   : > { %539 = dma.done.wait (%p459_p1), %s357_s11, 1024  }
  0xf7   : > { %541 = vsyncadd (%p459_p1), %s357_s11, 4294966272  ;;  %p13_p2 = scmp.ge.s32.totalorder %s606_s18, 4   ;;  %s709_s12 = smov %s548_s13 }
  0xf8   : > { %s710_s13 = smov %s552_s14  ;;  %s711_s14 = smov %s617_s21 }
  0xf9   : > { %s712_s15 = smov %s606_s18  ;;  %15 = sbr.rel (!%p13_p2) target bundleno = 3 (0x3), region = 67 }
  0xfe   :  { %362 = vsyncpa [#allocation3], 1 }
  0xff   :  { %364 = vsyncpa [#allocation3 + $0x1], 1 }

</bundles_post_ra>
